<compile_context>
chip_gen: v7x
topology: tpu7x:2x2x1
jax: 0.10.0
libtpu: 0.0.40
codegen_flags: <defaults>
</compile_context>

<pallas_src>
import functools

import jax
import jax.numpy as jnp
from jax.experimental import pallas as pl
from jax.experimental.pallas import tpu as pltpu


def _soft_ce_kernel(x_ref, t_ref, out_ref, *, hw, tile):
    """One grid step: (C, tile) slab -> scalar partial sum in an (8,128) block.

    x_ref/t_ref blocks are (C, tile) after squeezing the batch dim.  The
    contribution of this slab is sum_{c, col} target * (-log_softmax(x)).
    """
    x = x_ref[...].astype(jnp.float32)          # (C, T)
    t = t_ref[...].astype(jnp.float32)          # (C, T)

    # Mask the ragged last tile (static branch: only emitted when needed).
    if hw % tile != 0:
        col_ids = pl.program_id(1) * tile + jax.lax.broadcasted_iota(
            jnp.int32, (1, tile), 1)
        valid = col_ids < hw                    # (1, T)
        x = jnp.where(valid, x, 0.0)            # masked cols -> lse=log(C)
        t = jnp.where(valid, t, 0.0)            # masked cols -> zero weight

    # Numerically-stable log-softmax pieces over the channel axis (axis 0).
    m = jnp.max(x, axis=0, keepdims=True)       # (1, T)
    z = x - m                                   # (C, T)
    lse = jnp.log(jnp.sum(jnp.exp(z), axis=0, keepdims=True))   # (1, T)

    # sum_c t * (lse - z)  ==  sum_c t * nll   (no (C,T) broadcast of lse)
    col = lse * jnp.sum(t, axis=0, keepdims=True) \
        - jnp.sum(t * z, axis=0, keepdims=True)                 # (1, T)

    s = jnp.sum(col)                            # scalar partial for this step

    # Write the partial into element [0,0] of this step's (8,128) output block.
    ri = jax.lax.broadcasted_iota(jnp.int32, (8, 128), 0)
    ci = jax.lax.broadcasted_iota(jnp.int32, (8, 128), 1)
    out_ref[...] = jnp.where((ri == 0) & (ci == 0), s, 0.0)


def _choose_tile(c, hw, itemsize, *, max_tile=4096,
                 vmem_input_budget=12 * 1024 * 1024):
    """Largest legal lane tile: multiple of 128 (or the full HW extent),
    sized against the double-buffered input VMEM budget (v7x: 64 MiB total)."""
    if hw <= 128:
        return hw                               # full extent -> always legal
    bytes_per_col = 2 * 2 * c * itemsize        # 2 inputs x 2 pipeline buffers
    cap = max(128, (vmem_input_budget // bytes_per_col) // 128 * 128)
    return int(min(max_tile, cap, (hw // 128) * 128))


def soft_ce_loss(inp, target):
    """inp, target: (N, C, H, W), target in [0, 1]. Returns scalar mean loss."""
    assert inp.shape == target.shape
    n, c, h, w = inp.shape
    hw = h * w
    numel = n * c * hw

    # Free, contiguous reshapes (no transpose, no pad -> no extra HBM traffic).
    x3 = inp.reshape(n, c, hw)
    t3 = target.reshape(n, c, hw)

    itemsize = max(jnp.dtype(inp.dtype).itemsize, jnp.dtype(target.dtype).itemsize)
    tile = _choose_tile(c, hw, itemsize)
    grid_t = pl.cdiv(hw, tile)

    kernel = functools.partial(_soft_ce_kernel, hw=hw, tile=tile)

    partials = pl.pallas_call(
        kernel,
        out_shape=jax.ShapeDtypeStruct((n * 8, grid_t * 128), jnp.float32),
        grid_spec=pltpu.PrefetchScalarGridSpec(
            num_scalar_prefetch=0,
            grid=(n, grid_t),
            in_specs=[
                pl.BlockSpec((None, c, tile), lambda b, i: (b, 0, i)),
                pl.BlockSpec((None, c, tile), lambda b, i: (b, 0, i)),
            ],
            out_specs=pl.BlockSpec((8, 128), lambda b, i: (b, i)),
        ),
        compiler_params=pltpu.CompilerParams(
            dimension_semantics=("parallel", "parallel"),
            vmem_limit_bytes=32 * 1024 * 1024,
        ),
    )(x3, t3)

    # reduction == 'mean': tiny host-side/XLA reduce over per-step partials.
    return jnp.sum(partials) / numel


def _reference(inp, target):
    nll = -jax.nn.log_softmax(inp, axis=1)
    return jnp.sum(nll * target) / target.size


if __name__ == "__main__":
    key = jax.random.PRNGKey(0)
    k1, k2, k3, k4 = jax.random.split(key, 4)

    # Main check: shapes implied by the module (batch=2, channels=4, 16x16).
    N, C, H, W = 2, 4, 16, 16
    x = jax.random.normal(k1, (N, C, H, W), dtype=jnp.float32)
    tgt = jax.nn.softmax(jax.random.normal(k2, (N, C, H, W), dtype=jnp.float32), axis=1)

    loss = soft_ce_loss(x, tgt)
    jax.block_until_ready(loss)
    ref = _reference(x, tgt)
    assert jnp.allclose(loss, ref, rtol=1e-5, atol=1e-6), (loss, ref)

    # Extra check: ragged HW (225 = 128 + 97) exercises the in-kernel masking
    # and the multi-tile path; tiny shapes, negligible runtime.
    x2 = jax.random.normal(k3, (1, 3, 9, 25), dtype=jnp.float32)
    tgt2 = jax.nn.softmax(jax.random.normal(k4, (1, 3, 9, 25), dtype=jnp.float32), axis=1)
    loss2 = soft_ce_loss(x2, tgt2)
    jax.block_until_ready(loss2)
    ref2 = _reference(x2, tgt2)
    assert jnp.allclose(loss2, ref2, rtol=1e-5, atol=1e-6), (loss2, ref2)

    # TODO(synk): per-channel `weights` scaling and 'none'/'sum' reductions not
    # wired into the kernel (default constructor uses weights=None, reduction='mean').
    print("KERNEL_OK")
</pallas_src>

<mosaic_0001>
module attributes {stable_mosaic.version = 11 : i64} {
  func.func @_soft_ce_kernel(%arg0: i32, %arg1: i32, %arg2: memref<1x4x256xf32, #tpu.memory_space<vmem>>, %arg3: memref<1x4x256xf32, #tpu.memory_space<vmem>>, %arg4: memref<8x128xf32, #tpu.memory_space<vmem>>) attributes {dimension_semantics = [#tpu.dimension_semantics<parallel>, #tpu.dimension_semantics<parallel>], iteration_bounds = array<i64: 2, 1>, scalar_prefetch = 0 : i64, scratch_operands = 0 : i64, tpu.core_type = #tpu.core_type<tc>, window_params = [{transform_indices = @transform_0, window_bounds = array<i64: 1, 4, 256>}, {transform_indices = @transform_1, window_bounds = array<i64: 1, 4, 256>}, {transform_indices = @transform_2, window_bounds = array<i64: 8, 128>}]} {
    %c0 = arith.constant 0 : index
    %c0_0 = arith.constant 0 : index
    %c0_1 = arith.constant 0 : index
    %0 = vector.load %arg2[%c0, %c0_0, %c0_1] : memref<1x4x256xf32, #tpu.memory_space<vmem>>, vector<1x4x256xf32>
    %1 = vector.shape_cast %0 : vector<1x4x256xf32> to vector<4x256xf32>
    %c0_2 = arith.constant 0 : index
    %c0_3 = arith.constant 0 : index
    %c0_4 = arith.constant 0 : index
    %2 = vector.load %arg3[%c0_2, %c0_3, %c0_4] : memref<1x4x256xf32, #tpu.memory_space<vmem>>, vector<1x4x256xf32>
    %3 = vector.shape_cast %2 : vector<1x4x256xf32> to vector<4x256xf32>
    %cst = arith.constant dense<0xFF800000> : vector<256xf32>
    %4 = vector.multi_reduction <maximumf>, %1, %cst [0] : vector<4x256xf32> to vector<256xf32>
    %5 = vector.shape_cast %4 : vector<256xf32> to vector<1x256xf32>
    %6 = vector.broadcast %5 : vector<1x256xf32> to vector<4x256xf32>
    %7 = arith.subf %1, %6 : vector<4x256xf32>
    %8 = math.exp %7 : vector<4x256xf32>
    %cst_5 = arith.constant dense<0.000000e+00> : vector<256xf32>
    %9 = vector.multi_reduction <add>, %8, %cst_5 [0] : vector<4x256xf32> to vector<256xf32>
    %10 = vector.shape_cast %9 : vector<256xf32> to vector<1x256xf32>
    %11 = math.log %10 : vector<1x256xf32>
    %cst_6 = arith.constant dense<0.000000e+00> : vector<256xf32>
    %12 = vector.multi_reduction <add>, %3, %cst_6 [0] : vector<4x256xf32> to vector<256xf32>
    %13 = vector.shape_cast %12 : vector<256xf32> to vector<1x256xf32>
    %14 = arith.mulf %11, %13 : vector<1x256xf32>
    %15 = arith.mulf %3, %7 : vector<4x256xf32>
    %cst_7 = arith.constant dense<0.000000e+00> : vector<256xf32>
    %16 = vector.multi_reduction <add>, %15, %cst_7 [0] : vector<4x256xf32> to vector<256xf32>
    %17 = vector.shape_cast %16 : vector<256xf32> to vector<1x256xf32>
    %18 = arith.subf %14, %17 : vector<1x256xf32>
    %19 = vector.shape_cast %18 : vector<1x256xf32> to vector<1x1x256xf32>
    %cst_8 = arith.constant dense<0.000000e+00> : vector<1xf32>
    %20 = vector.multi_reduction <add>, %19, %cst_8 [1, 2] : vector<1x1x256xf32> to vector<1xf32>
    %21 = vector.shape_cast %20 : vector<1xf32> to vector<1x1x1xf32>
    %22 = vector.extract %21[0, 0, 0] : f32 from vector<1x1x1xf32>
    %23 = tpu.iota {dimensions = array<i32: 0>} : vector<8x128xi32>
    %24 = tpu.iota {dimensions = array<i32: 1>} : vector<8x128xi32>
    %c0_i32 = arith.constant 0 : i32
    %25 = vector.broadcast %c0_i32 : i32 to vector<8x128xi32>
    %26 = arith.cmpi eq, %23, %25 : vector<8x128xi32>
    %c0_i32_9 = arith.constant 0 : i32
    %27 = vector.broadcast %c0_i32_9 : i32 to vector<8x128xi32>
    %28 = arith.cmpi eq, %24, %27 : vector<8x128xi32>
    %29 = arith.andi %26, %28 : vector<8x128xi1>
    %cst_10 = arith.constant 0.000000e+00 : f32
    %30 = vector.broadcast %22 : f32 to vector<8x128xf32>
    %31 = vector.broadcast %cst_10 : f32 to vector<8x128xf32>
    %32 = arith.select %29, %30, %31 : vector<8x128xi1>, vector<8x128xf32>
    %c0_11 = arith.constant 0 : index
    %c0_12 = arith.constant 0 : index
    %33 = vector.load %arg4[%c0_11, %c0_12] : memref<8x128xf32, #tpu.memory_space<vmem>>, vector<8x128xf32>
    tpu.vector_store %arg4[%c0_11, %c0_12], %32 {strides = array<i32>} : memref<8x128xf32, #tpu.memory_space<vmem>>, vector<8x128xf32>,
    return
  }
  func.func @transform_0(%arg0: i32, %arg1: i32) -> (i32, i32, i32) {
    %c0_i32 = arith.constant 0 : i32
    %c0_i32_0 = arith.constant 0 : i32
    return %arg0, %c0_i32, %arg1 : i32, i32, i32
  }
  func.func @transform_1(%arg0: i32, %arg1: i32) -> (i32, i32, i32) {
    %c0_i32 = arith.constant 0 : i32
    %c0_i32_0 = arith.constant 0 : i32
    return %arg0, %c0_i32, %arg1 : i32, i32, i32
  }
  func.func @transform_2(%arg0: i32, %arg1: i32) -> (i32, i32) {
    %c0_i32 = arith.constant 0 : i32
    return %arg0, %arg1 : i32, i32
  }
}

</mosaic_0001>

<bundles_post_ra>
// kernel: tpu_custom_call.1
= control target key start
LH: loop header
LB: loop body
LE: loop exit
PB: predicated region body
PF: predicated region fallthrough
CT: control target
= control target key end

     0   :  { %7 = vsyncpa [#allocation3], 0  ;;  %s951_s0 = inlined_call_operand.hbm [shape: f32[2,4,256], index: 0, kind: input, shape index: {}]   ;;  %s952_s1 = inlined_call_operand.hbm [shape: f32[2,4,256], index: 1, kind: input, shape index: {}]   ;;  %s953_s2 = inlined_call_operand.hbm [shape: f32[16,128], index: 2, kind: output, shape index: {}]  }
   0x1   :  { %9 = vsyncpa [#allocation3 + $0x1], 0 }
   0x2   :  { %10 = vsyncpa [#allocation6], 0 }
   0x3   :  { %12 = vsyncpa [#allocation6 + $0x1], 0 }
   0x4   :  { %13 = vsyncpa [#allocation4], 0 }
   0x5   :  { %15 = vsyncpa [#allocation4 + $0x1], 0  ;;  %s718_s9 = smov 0   ;;  %s720_s10 = smov 0  }
   0x6   :  { %s722_s11 = smov 0   ;;  %s724_s12 = smov 0  }
   0x7   :  { %s726_s13 = smov 0   ;;  %s728_s14 = smov 0  }
   0x8 LB: > { %s455_s15 = sadd.s32 4294967295, %s698_s14   ;;  %s456_s16 = sadd.s32 4294967294, %s698_s14   ;;  %s698_s14 = sphi %s728_s14, %s21_s14   ;;  %s694_s13 = sphi %s726_s13, %s973_s13   ;;  %s690_s12 = sphi %s724_s12, %s972_s12   ;;  %s686_s11 = sphi %s722_s11, %s971_s11   ;;  %s682_s10 = sphi %s720_s10, %s970_s10   ;;  %s678_s9 = sphi %s718_s9, %s969_s9  }
   0x9   : > { %s33_s17 = sadd.s32 1, %s694_s13  ;;  %s42_s18 = sadd.s32 1, %s686_s11 }
   0xa   : > { %p35_p0 = scmp.ge.s32.totalorder %s33_s17, 2  ;;  %p49_p1 = scmp.ne.s32.totalorder %s686_s11, %s682_s10 }
   0xb   : > { %p50_p2 = scmp.eq.s32.totalorder %s698_s14, 0  ;;  %p55_p3 = scmp.ne.s32.totalorder %s682_s10, %s678_s9 }
   0xc   : > { %s975_s17 = smov (%p35_p0, %s33_s17), 0  ;;  %p56_p5 = scmp.eq.s32.totalorder %s455_s15, 0 }
   0xd   : > { %p759_p4 = por %p50_p2, %p49_p1  ;;  %s37_s20 = ssub.s32 %s694_s13, %s975_s17 }
   0xe   : > { %p109_p6 = scmp.eq.s32.totalorder %s455_s15, 1  ;;  %p40_p7 = scmp.eq.s32.totalorder %s37_s20, 0 }
   0xf   : > { %p765_p8 = por %p56_p5, %p55_p3  ;;  %p115_p10 = scmp.eq.s32.totalorder %s456_s16, 1 }
  0x10   : > { %p769_p9 = por %p109_p6, %p49_p1  ;;  %p494_p13 = scmp.lt.s32.totalorder %s698_s14, 2 }
  0x11   : > { %s957_s21 = scalar_select %p765_p8, 1, 0 }
  0x12   : > { %s958_s22 = scalar_select %p769_p9, 1, 0 }
  0x13   : > { %s774_s23 = scalar_select %p40_p7, %s686_s11, %s42_s18  }
  0x14   : > { %p776_p11 = por %p115_p10, %p55_p3  ;;  %s783_s25 = sand.u32 1, %s686_s11  }
  0x15   : > { %s459_s26 = sshll.u32 %s783_s25, 3  ;;  %s473_s27 = sshll.u32 %s694_s13, 7 }
  0x16   : > { %s959_s24 = scalar_select %p776_p11, 1, 0 }
  0x17   : > { %s792_s30 = scalar_lea.hbm %s951_s0, %s473_s27  ;;  %s139_s3 = scalar_lea.vmem [#allocation2], %s459_s26 }
  0x18   : > { %s149_s4 = sshll.u32 %s139_s3, 4  ;;  %p800_p0 = pnand %p494_p13, %p759_p4  ;;  %s796_s4 = int_to_ptr.vmem [resolvable:$true] %s149_s4 }
  0x19   : > { %s136_s6 = scalar_lea.sflag [#allocation3], %s783_s25  ;;  %s552_s7 = scalar_lea.hbm %s792_s30, 128 }
  0x1a   : > { %p553_p3 = scmp.ne.s32.totalorder %s792_s30, %s552_s7  ;;  %p554_p5 = pneg %p800_p0 }
  0x1b   : > { %s557_s16 = scalar_lea.hbm %s951_s0, 256  ;;  %p558_p4 = scmp.lt.u32.totalorder %s792_s30, %s951_s0 }
  0x1c   : > { %p555_p6 = pnand %p554_p5, %p553_p3  ;;  %p559_p10 = scmp.lt.u32.totalorder %s557_s16, %s552_s7 }
  0x1d   : > { %p561_p12 = scmp.lt.u32.totalorder %s552_s7, %s792_s30 }
  0x1e   : > { %p556_p7 = pneg %p555_p6  ;;  %p560_p13 = por %p559_p10, %p558_p4 }
  0x20   : > { %p562_p1 = por %p561_p12, %p560_p13 }
  0x22   : > { %p563_p2 = pnand %p562_p1, %p556_p7 }
  0x24   : > { %566 = shalt.err (!%p563_p2)
}
  0x25   : > { %s567_s20 = scalar_lea.vmem %s796_s4, 128  ;;  %s700_s28 = smov [#allocation2]  }
  0x26   : > { %p568_p3 = scmp.ne.s32.totalorder %s796_s4, %s567_s20  ;;  %s572_s29 = sshll.u32 %s700_s28, 4  ;;  %s573_s29 = int_to_ptr.vmem [resolvable:$false] %s572_s29 }
  0x27   : > { %s574_s3 = scalar_lea.vmem %s573_s29, 256  ;;  %p575_p9 = scmp.lt.s32.totalorder %s796_s4, %s573_s29 }
  0x28   : > { %p570_p6 = pnand %p568_p3, %p554_p5  ;;  %p576_p4 = scmp.lt.s32.totalorder %s574_s3, %s567_s20 }
  0x2a   : > { %p571_p11 = pneg %p570_p6  ;;  %p577_p10 = por %p576_p4, %p575_p9 }
  0x2c   : > { %p578_p12 = pnand %p577_p10, %p571_p11 }
  0x2e   : > { %581 = shalt.err (!%p578_p12)
}
  0x2f   : > { %486 = dma.hbm_to_vmem [thread:$0]  (!%p800_p0), %s792_s30, 128, %s796_s4, %s136_s6  }
  0x30   : > { %p961_p1 = scmp.lt.s32.totalorder %s698_s14, 3  ;;  %p962_p2 = scmp.ge.s32.totalorder %s698_s14, 1 }
  0x31   : > { %s845_s16 = scalar_lea.hbm %s952_s1, %s473_s27  ;;  %s160_s18 = scalar_lea.vmem [#allocation5], %s459_s26 }
  0x32   : > { %p836_p7 = pnand %p962_p2, %p961_p1  ;;  %s170_s19 = sshll.u32 %s160_s18, 4  ;;  %s171_s19 = int_to_ptr.vmem [resolvable:$true] %s170_s19 }
  0x33   : > { %s157_s30 = scalar_lea.sflag [#allocation6], %s783_s25  ;;  %s582_s4 = scalar_lea.hbm %s845_s16, 128 }
  0x34   : > { %s963_s7 = scalar_select %p836_p7, 1, 0 }
  0x35   : > { %p583_p9 = scmp.ne.s32.totalorder %s845_s16, %s582_s4  ;;  %s587_s27 = scalar_lea.hbm %s952_s1, 256 }
  0x36   : > { %p588_p3 = scmp.lt.u32.totalorder %s845_s16, %s952_s1  ;;  %p589_p6 = scmp.lt.u32.totalorder %s587_s27, %s582_s4 }
  0x37   : > { %p585_p11 = pnand %p583_p9, %p554_p5  ;;  %p591_p10 = scmp.lt.u32.totalorder %s582_s4, %s845_s16 }
  0x38   : > { %p590_p4 = por %p589_p6, %p588_p3 }
  0x39   : > { %p586_p13 = pneg %p585_p11 }
  0x3a   : > { %p592_p12 = por %p591_p10, %p590_p4 }
  0x3c   : > { %p593_p1 = pnand %p592_p12, %p586_p13 }
  0x3e   : > { %596 = shalt.err (!%p593_p1)
}
  0x3f   : > { %s597_s25 = scalar_lea.vmem %s171_s19, 128  ;;  %s701_s26 = smov [#allocation5]  }
  0x40   : > { %p598_p2 = scmp.ne.s32.totalorder %s171_s19, %s597_s25  ;;  %s602_s3 = sshll.u32 %s701_s26, 4  ;;  %s603_s3 = int_to_ptr.vmem [resolvable:$false] %s602_s3 }
  0x41   : > { %s604_s8 = scalar_lea.vmem %s603_s3, 256  ;;  %p605_p8 = scmp.lt.s32.totalorder %s171_s19, %s603_s3 }
  0x42   : > { %p600_p9 = pnand %p598_p2, %p554_p5  ;;  %p606_p7 = scmp.lt.s32.totalorder %s604_s8, %s597_s25 }
  0x44   : > { %p601_p11 = pneg %p600_p9  ;;  %p607_p3 = por %p606_p7, %p605_p8 }
  0x46   : > { %p608_p6 = pnand %p607_p3, %p601_p11 }
  0x48   : > { %611 = shalt.err (!%p608_p6)
}
  0x49   : > { %489 = dma.hbm_to_vmem [thread:$0]  (!%p800_p0), %s845_s16, 128, %s171_s19, %s157_s30  }
  0x4a   : > { %p964_p13 = scmp.ne.s32.totalorder %s963_s7, 0 }
  0x4b   : > { %s872_s15 = sand.u32 (!%p964_p13), 1, %s682_s10   ;;  %p965_p8 = scmp.ne.s32.totalorder (!%p964_p13), %s957_s21, 0 }
  0x4c   : > { %179 = sbr.rel (%p964_p13) target bundleno = 374 (0x176), region = 28  ;;  %s875_s18 = sshll.u32 (!%p964_p13), %s872_s15, 3 }
  0x4d   : > { %s182_s4 = scalar_lea.sflag (!%p964_p13), [#allocation3], %s872_s15  ;;  %s185_s6 = scalar_lea.vmem (!%p964_p13), [#allocation2], %s875_s18 }
  0x53   : > { %665 = dma.done.wait (%p965_p8), %s182_s4, 128  }
  0x54   : > { %667 = vsyncadd (%p965_p8), %s182_s4, 4294967168  ;;  %s191_s5 = scalar_lea.sflag [#allocation6], %s872_s15  ;;  %s194_s7 = scalar_lea.vmem [#allocation5], %s875_s18 }
  0x55   : > { %669 = dma.done.wait (%p965_p8), %s191_s5, 128  }
  0x56   : > { %671 = vsyncadd (%p965_p8), %s191_s5, 4294967168  ;;  %vm227_vm0 = vcmask 1043456   ;;  %v222_v0 = vld [vmem:[%s185_s6] sm:$0xff]  ;;  %v223_v19 = vld [vmem:[%s194_s7] sm:$0xff]  ;;  %vm309_vm1 = vcmask 1040384   ;;  %s470_s21 = sshll.u32 %s690_s12, 7 }
  0x57   : > { %v225_v1 = vcombine.high %v222_v0, %v222_v0  ;;  %v228_v2 = vsel %vm227_vm0, %v222_v0, -inf  ;;  %v271_v21 = vcombine.high %v223_v19, %v223_v19  ;;  %v273_v23 = vsel %vm227_vm0, %v223_v19, 0.0  ;;  %s219_s16 = scalar_lea.vmem [#allocation7], %s875_s18  ;;  %s902_s28 = scalar_lea.hbm %s953_s2, %s470_s21 }
  0x58   : > { %v229_v3 = vrot.slane %v228_v2, 4  ;;  %v274_v31 = vrot.slane %v273_v23, 4  ;;  %s347_s19 = sshll.u32 %s219_s16, 4  ;;  %s333_s29 = scalar_lea.sflag [#allocation4], %s872_s15  ;;  %s904_s19 = int_to_ptr.vmem [resolvable:$true] %s347_s19 }
  0x59   : > { %v235_v4 = vsel %vm227_vm0, %v225_v1, -inf  ;;  %v280_v28 = vsel %vm227_vm0, %v271_v21, 0.0  ;;  %v322_v21 = vlaneseq  ;;  %s612_s25 = scalar_lea.vmem %s904_s19, 128  ;;  %p966_p5 = scmp.ne.s32.totalorder %s958_s22, 0 }
  0x5a   : > { %v230_v5 = vmax.f32 %v228_v2, %v229_v3  ;;  %v236_v6 = vrot.slane %v235_v4, 4  ;;  %v281_v35 = vrot.slane %v280_v28, 4  ;;  %v275_v39 = vadd.f32 %v274_v31, %v273_v23  ;;  %p613_p0 = scmp.ne.s32.totalorder %s904_s19, %s612_s25  ;;  %s702_s12 = smov [#allocation7]  }
  0x5b   : > { %v325_v23 = vand.u32 127, %v322_v21  ;;  %s616_s26 = sshll.u32 %s702_s12, 4  ;;  %s617_s26 = int_to_ptr.vmem [resolvable:$false] %s616_s26 }
  0x5c   : > { %v231_v7 = vrot.slane %v230_v5, 2  ;;  %v237_v8 = vmax.f32 %v235_v4, %v236_v6  ;;  %v282_v43 = vadd.f32 %v281_v35, %v280_v28  ;;  %v276_v47 = vrot.slane %v275_v39, 2  ;;  %p614_p7 = pnand %p613_p0, %p966_p5  ;;  %s618_s3 = scalar_lea.vmem %s617_s26, 256 }
  0x5d   : > { %vm327_vm3 = vcmp.eq.s32.totalorder %v325_v23, 0  ;;  %p619_p10 = scmp.lt.s32.totalorder %s904_s19, %s617_s26  ;;  %p620_p12 = scmp.lt.s32.totalorder %s618_s3, %s612_s25 }
  0x5e   : > { %v232_v9 = vmax.f32 %v230_v5, %v231_v7  ;;  %v238_v10 = vrot.slane %v237_v8, 2  ;;  %v283_v51 = vrot.slane %v282_v43, 2  ;;  %v277_v54 = vadd.f32 %v276_v47, %v275_v39  ;;  %p615_p4 = pneg %p614_p7 }
  0x5f   : > { %p621_p1 = por %p620_p12, %p619_p10 }
  0x60   : > { %v233_v11 = vrot.slane %v232_v9, 1  ;;  %v239_v12 = vmax.f32 %v237_v8, %v238_v10  ;;  %v284_v56 = vadd.f32 %v283_v51, %v282_v43  ;;  %v278_v58 = vrot.slane %v277_v54, 1 }
  0x61   : > { %p622_p2 = pnand %p621_p1, %p615_p4 }
  0x62   : > { %v234_v13 = vmax.f32 %v232_v9, %v233_v11  ;;  %v240_v14 = vrot.slane %v239_v12, 1  ;;  %v285_v60 = vrot.slane %v284_v56, 1  ;;  %v279_v62 = vadd.f32 %v278_v58, %v277_v54 }
  0x64   : > { %v241_v15 = vmax.f32 %v239_v12, %v240_v14  ;;  %v286_v2 = vadd.f32 %v285_v60, %v284_v56 }
  0x66   : > { %v244_v16 = vcombine.low %v234_v13, %v241_v15 }
  0x68   : > { %v246_v17 = vsub.f32 %v222_v0, %v244_v16 }
  0x6a   : > { %v247_v18 = vmul.f32 1.442695, %v246_v17  ;;  %v289_v20 = vmul.f32 %v246_v17, %v223_v19 }
  0x6c   : > { %546 = vpow2.f32 %v247_v18  ;;  %v291_v24 = vcombine.high %v289_v20, %v289_v20  ;;  %v293_v29 = vsel %vm227_vm0, %v289_v20, 0.0 }
  0x6d   : > { %v294_v36 = vrot.slane %v293_v29, 4 }
  0x6e   : > { %v300_v34 = vsel %vm227_vm0, %v291_v24, 0.0 }
  0x6f   : > { %v301_v40 = vrot.slane %v300_v34, 4  ;;  %v295_v44 = vadd.f32 %v294_v36, %v293_v29 }
  0x71   : > { %v302_v48 = vadd.f32 %v301_v40, %v300_v34  ;;  %v296_v52 = vrot.slane %v295_v44, 2 }
  0x73   : > { %v303_v55 = vrot.slane %v302_v48, 2  ;;  %v297_v57 = vadd.f32 %v296_v52, %v295_v44 }
  0x75   : > { %v304_v59 = vadd.f32 %v303_v55, %v302_v48  ;;  %v298_v61 = vrot.slane %v297_v57, 1 }
  0x76   : > { %v547_v22 = vpop.eup %546 }
  0x77   : > { %v250_v25 = vcombine.high %v547_v22, %v547_v22  ;;  %v252_v26 = vsel %vm227_vm0, %v547_v22, 0.0  ;;  %v305_v63 = vrot.slane %v304_v59, 1  ;;  %v299_v3 = vadd.f32 %v298_v61, %v297_v57 }
  0x78   : > { %v253_v27 = vrot.slane %v252_v26, 4  ;;  %v323_v22 = vshrl.u32 %v322_v21, 7 }
  0x79   : > { %v259_v30 = vsel %vm227_vm0, %v250_v25, 0.0  ;;  %v306_v7 = vadd.f32 %v305_v63, %v304_v59 }
  0x7a   : > { %v254_v32 = vadd.f32 %v253_v27, %v252_v26  ;;  %v260_v33 = vrot.slane %v259_v30, 4  ;;  %vm326_vm2 = vcmp.eq.s32.totalorder %v323_v22, 0 }
  0x7b   : > { %vm328_vm4 = vmand %vm326_vm2, %vm327_vm3 }
  0x7c   : > { %v255_v37 = vrot.slane %v254_v32, 2  ;;  %v261_v38 = vadd.f32 %v260_v33, %v259_v30 }
  0x7e   : > { %v256_v41 = vadd.f32 %v255_v37, %v254_v32  ;;  %v262_v42 = vrot.slane %v261_v38, 2 }
  0x80   : > { %v257_v45 = vrot.slane %v256_v41, 1  ;;  %v263_v46 = vadd.f32 %v262_v42, %v261_v38 }
  0x82   : > { %v258_v49 = vadd.f32 %v257_v45, %v256_v41  ;;  %v264_v50 = vrot.slane %v263_v46, 1 }
  0x84   : > { %v265_v53 = vadd.f32 %v264_v50, %v263_v46  ;;  %548 = vlog2.f32 %v258_v49 }
  0x86   : > { %550 = vlog2.f32 %v265_v53 }
  0x8e   : > { %v549_v0 = vpop.eup %548 }
  0x8f   : > { %v267_v1 = vmul.f32 0.6931472, %v549_v0 }
  0x90   : > { %v551_v4 = vpop.eup %550 }
  0x91   : > { %v269_v5 = vmul.f32 0.6931472, %v551_v4  ;;  %v287_v6 = vmul.f32 %v279_v62, %v267_v1 }
  0x93   : > { %v288_v8 = vmul.f32 %v286_v2, %v269_v5  ;;  %v307_v9 = vsub.f32 %v287_v6, %v299_v3 }
  0x95   : > { %v308_v10 = vsub.f32 %v288_v8, %v306_v7  ;;  %v310_v11 = vsel %vm309_vm1, %v307_v9, 0.0 }
  0x97   : > { %v311_v12 = vsel %vm309_vm1, %v308_v10, 0.0 }
  0x98   : > { %v312_v13 = vadd.f32 %v311_v12, %v310_v11 }
  0x9a   : > { %313 = vadd.xlane.f32.xlu0 %v312_v13 }
 0x127   : > { %v314_v14 = vpop.xlane.xlu0 %313 }
 0x128   : > { %v315_v15 = vrot.slane %v314_v14, 4 }
 0x12a   : > { %v316_v16 = vadd.f32 %v315_v15, %v314_v14 }
 0x12c   : > { %v317_v17 = vrot.slane %v316_v16, 2 }
 0x12e   : > { %v318_v18 = vadd.f32 %v317_v17, %v316_v16 }
 0x130   : > { %v319_v19 = vrot.slane %v318_v18, 1 }
 0x132   : > { %v320_v20 = vadd.f32 %v319_v19, %v318_v18 }
 0x134   : > { %475 = vpush %v320_v20 }
 0x165   : > { %s476_s30 = spop %475 }
 0x166   : > { %v329_v24 = vstv %s476_s30 }
 0x167   : > { %v330_v25 = vsel %vm328_vm4, %v329_v24, 0.0 }
 0x168   : > { %331 = vst [vmem:[%s219_s16] sm:$0xff] %v330_v25 }
 0x169   : > { %625 = shalt.err (!%p622_p2)
}
 0x16a   : > { %s626_s8 = scalar_lea.hbm %s902_s28, 128  ;;  %s630_s4 = scalar_lea.hbm %s953_s2, 256 }
 0x16b   : > { %p627_p9 = scmp.ne.s32.totalorder %s902_s28, %s626_s8  ;;  %p631_p6 = scmp.lt.u32.totalorder %s902_s28, %s953_s2 }
 0x16c   : > { %p632_p13 = scmp.lt.u32.totalorder %s630_s4, %s626_s8  ;;  %p634_p0 = scmp.lt.u32.totalorder %s626_s8, %s902_s28 }
 0x16d   : > { %p628_p11 = pnand %p627_p9, %p966_p5 }
 0x16e   : > { %p633_p8 = por %p632_p13, %p631_p6 }
 0x16f   : > { %p629_p3 = pneg %p628_p11 }
 0x170   : > { %p635_p7 = por %p634_p0, %p633_p8 }
 0x172   : > { %p636_p4 = pnand %p635_p7, %p629_p3 }
 0x174   : > { %639 = shalt.err (!%p636_p4)
}
 0x175   : > { %481 = dma.vmem_to_hbm [thread:$0]  (%p966_p5), %s904_s19, 128, %s902_s28, %s333_s29  }
 0x176 PF: > { %s359_s7 = sand.u32 1, %s678_s9   ;;  %p967_p10 = scmp.ne.s32.totalorder %s959_s24, 0 }
 0x177   : > { %p968_p12 = scmp.ge.s32.totalorder %s698_s14, 2  ;;  %s360_s21 = scalar_lea.sflag [#allocation4], %s359_s7 }
 0x179   : > { %p491_p1 = pnand %p968_p12, %p967_p10 }
 0x17b   : > { %673 = dma.done.wait (!%p491_p1), %s360_s21, 128  }
 0x17c   : > { %675 = vsyncadd (!%p491_p1), %s360_s21, 4294967168  ;;  %s21_s14 = sadd.s32 1, %s698_s14   ;;  %s969_s9 = smov %s682_s10 }
 0x17d   : > { %p18_p2 = scmp.ge.s32.totalorder %s21_s14, 4   ;;  %s970_s10 = smov %s686_s11 }
 0x17e   : > { %s971_s11 = smov %s774_s23  ;;  %s972_s12 = smov %s694_s13 }
 0x17f   : > { %s973_s13 = smov %s975_s17  ;;  %20 = sbr.rel (!%p18_p2) target bundleno = 8 (0x8), region = 86 }
 0x186   :  { %365 = vsyncpa [#allocation3], 1 }
 0x187   :  { %367 = vsyncpa [#allocation3 + $0x1], 1 }
 0x188   :  { %368 = vsyncpa [#allocation6], 1 }
 0x189   :  { %370 = vsyncpa [#allocation6 + $0x1], 1 }
 0x18a   :  { %371 = vsyncpa [#allocation4], 1 }
 0x18b   :  { %373 = vsyncpa [#allocation4 + $0x1], 1 }

</bundles_post_ra>
